<compile_context>
chip_gen: v6e
topology: v6e:2x2x1
jax: 0.10.0
libtpu: 0.0.40
codegen_flags: <defaults>
</compile_context>

<pallas_src>
import math
import functools

import jax
import jax.numpy as jnp
from jax import lax
from jax.experimental import pallas as pl
from jax.experimental.pallas import tpu as pltpu


def _pick_tile(n, pref):
    """Largest tile in {pref, 512, 256, 128} dividing n, else the full extent."""
    for t in (pref, 512, 256, 128):
        if t <= n and n % t == 0 and t % 8 == 0:
            return t
    return n


def _tiling_defaults():
    """(q_tile, kv_tile, vmem_limit_bytes) chosen per chip generation."""
    try:
        vmem_bytes = pltpu.get_tpu_info().vmem_capacity_bytes
    except Exception:
        vmem_bytes = 128 * 1024 * 1024
    if vmem_bytes <= 64 * 1024 * 1024:        # v7x-class TensorCore (64 MiB VMEM)
        return 128, 128, 40 * 1024 * 1024
    return 512, 512, 64 * 1024 * 1024         # v5e / v6e (128 MiB VMEM)


# ---------------------------------------------------------------------------
# Projection kernels (weights already [in, out]; N-tiled over output columns).
# ---------------------------------------------------------------------------
def _proj_kernel(x_ref, w_ref, o_ref):
    o_ref[...] = jnp.dot(x_ref[...], w_ref[...],
                         preferred_element_type=jnp.float32).astype(o_ref.dtype)


def _qkv_proj_kernel(xq_ref, xk_ref, xv_ref, wq_ref, wk_ref, wv_ref,
                     qo_ref, ko_ref, vo_ref):
    qo_ref[...] = jnp.dot(xq_ref[...], wq_ref[...],
                          preferred_element_type=jnp.float32).astype(qo_ref.dtype)
    ko_ref[...] = jnp.dot(xk_ref[...], wk_ref[...],
                          preferred_element_type=jnp.float32).astype(ko_ref.dtype)
    vo_ref[...] = jnp.dot(xv_ref[...], wv_ref[...],
                          preferred_element_type=jnp.float32).astype(vo_ref.dtype)


# ---------------------------------------------------------------------------
# Flash-style multi-head attention + fused output projection.
# Grid = (B * q_tiles, kv_tiles); kv axis is the innermost reduction axis.
# ---------------------------------------------------------------------------
def _flash_attn_out_kernel(q_ref, k_ref, v_ref, wo_ref, o_ref,
                           m_sc, l_sc, acc_sc, *, head_num, d_k):
    kv_idx = pl.program_id(1)

    @pl.when(kv_idx == 0)
    def _init():
        m_sc[...] = jnp.full(m_sc.shape, -jnp.inf, dtype=jnp.float32)
        l_sc[...] = jnp.zeros(l_sc.shape, dtype=jnp.float32)
        acc_sc[...] = jnp.zeros(acc_sc.shape, dtype=jnp.float32)

    for h in range(head_num):                  # static, unrolled head loop
        lo = h * d_k
        # Ref-level static slices: only d_k lanes are loaded per head.
        qh = q_ref[0, :, lo:lo + d_k]          # (tq, d_k); 1/sqrt(d_k) folded into Wq
        kh = k_ref[0, :, lo:lo + d_k]          # (tk, d_k)
        vh = v_ref[0, :, lo:lo + d_k]          # (tk, d_k)

        # scores: contract d_k of both operands directly -> no K transpose.
        s = lax.dot_general(qh, kh, (((1,), (1,)), ((), ())),
                            preferred_element_type=jnp.float32)   # (tq, tk)

        m_prev = m_sc[h]                       # (tq, 1), head-major: lane 0
        l_prev = l_sc[h]
        m_new = jnp.maximum(m_prev, jnp.max(s, axis=-1, keepdims=True))
        alpha = jnp.exp(m_prev - m_new)
        p = jnp.exp(s - m_new)                 # (tq, tk) unnormalized probs

        l_sc[h] = alpha * l_prev + jnp.sum(p, axis=-1, keepdims=True)
        acc_sc[:, lo:lo + d_k] = (
            alpha * acc_sc[:, lo:lo + d_k]
            + jnp.dot(p.astype(vh.dtype), vh, preferred_element_type=jnp.float32))
        m_sc[h] = m_new

    @pl.when(kv_idx == pl.num_programs(1) - 1)
    def _finalize():
        # Exact per-head normalization (runs once per q tile -> negligible cost).
        for h in range(head_num):
            lo = h * d_k
            inv_l = 1.0 / l_sc[h]
            acc_sc[:, lo:lo + d_k] = acc_sc[:, lo:lo + d_k] * inv_l
        # Fused output projection; operands in a consistent dtype for the MXU.
        o_ref[0] = jnp.dot(acc_sc[...].astype(wo_ref.dtype), wo_ref[...],
                           preferred_element_type=jnp.float32).astype(o_ref.dtype)


# ---------------------------------------------------------------------------
# Wrapper
# ---------------------------------------------------------------------------
def mha_pallas(q, k, v, wq, wk, wv, wo, *, head_num, q_tile=None, kv_tile=None):
    B, S, D = q.shape
    assert D % head_num == 0
    d_k = D // head_num
    out_dtype = q.dtype
    scale = 1.0 / math.sqrt(d_k)

    q_tile_d, kv_tile_d, vmem_limit = _tiling_defaults()
    q_tile = q_tile or q_tile_d
    kv_tile = kv_tile or kv_tile_d

    # Pre-transpose weights once ([out, in] -> [in, out]); fold softmax scale into Wq.
    wq_t = (wq.T * scale).astype(wq.dtype)
    wk_t = wk.T
    wv_t = wv.T
    wo_t = wo.T

    M = B * S
    tm = _pick_tile(M, 256)

    # ---- Q/K/V projections --------------------------------------------------
    if q is k and k is v:
        # Self-attention: read the activation once, single fused (D, 3D) matmul.
        x = q.reshape(M, D)
        w_qkv = jnp.concatenate([wq_t, wk_t, wv_t], axis=1)       # (D, 3D)
        tn = _pick_tile(3 * D, 512)
        qkv = pl.pallas_call(
            _proj_kernel,
            out_shape=jax.ShapeDtypeStruct((M, 3 * D), out_dtype),
            grid_spec=pltpu.PrefetchScalarGridSpec(
                num_scalar_prefetch=0,
                grid=(M // tm, (3 * D) // tn),
                in_specs=[pl.BlockSpec((tm, D), lambda i, j: (i, 0)),
                          pl.BlockSpec((D, tn), lambda i, j: (0, j))],
                out_specs=pl.BlockSpec((tm, tn), lambda i, j: (i, j)),
            ),
            compiler_params=pltpu.CompilerParams(
                dimension_semantics=("parallel", "parallel"),
                vmem_limit_bytes=vmem_limit),
        )(x, w_qkv)
        qp = qkv[:, :D].reshape(B, S, D)
        kp = qkv[:, D:2 * D].reshape(B, S, D)
        vp = qkv[:, 2 * D:].reshape(B, S, D)
    else:
        # General (cross-attention) path: 3 activations, 3 N-tiled weights.
        tn = _pick_tile(D, 512)
        xq = q.reshape(M, D)
        xk = k.reshape(M, D)
        xv = v.reshape(M, D)
        x_spec = pl.BlockSpec((tm, D), lambda i, j: (i, 0))
        w_spec = pl.BlockSpec((D, tn), lambda i, j: (0, j))
        o_spec = pl.BlockSpec((tm, tn), lambda i, j: (i, j))
        qp, kp, vp = pl.pallas_call(
            _qkv_proj_kernel,
            out_shape=(jax.ShapeDtypeStruct((M, D), out_dtype),
                       jax.ShapeDtypeStruct((M, D), out_dtype),
                       jax.ShapeDtypeStruct((M, D), out_dtype)),
            grid_spec=pltpu.PrefetchScalarGridSpec(
                num_scalar_prefetch=0,
                grid=(M // tm, D // tn),
                in_specs=[x_spec, x_spec, x_spec, w_spec, w_spec, w_spec],
                out_specs=[o_spec, o_spec, o_spec],
            ),
            compiler_params=pltpu.CompilerParams(
                dimension_semantics=("parallel", "parallel"),
                vmem_limit_bytes=vmem_limit),
        )(xq, xk, xv, wq_t, wk_t, wv_t)
        qp = qp.reshape(B, S, D)
        kp = kp.reshape(B, S, D)
        vp = vp.reshape(B, S, D)

    # ---- Flash attention + fused output projection ---------------------------
    tq = _pick_tile(S, q_tile)
    tk = _pick_tile(S, kv_tile)
    nq = S // tq
    nkv = S // tk

    # Fuse batch and q-tile axes into one leading parallel axis (keeps both v7x
    # TensorCores busy even when B == 1).
    q_spec = pl.BlockSpec((1, tq, D), lambda i, ki: (i // nq, i % nq, 0))
    kv_spec = pl.BlockSpec((1, tk, D), lambda i, ki: (i // nq, ki, 0))
    wo_spec = pl.BlockSpec((D, D), lambda i, ki: (0, 0))
    out_spec = pl.BlockSpec((1, tq, D), lambda i, ki: (i // nq, i % nq, 0))

    kernel = functools.partial(_flash_attn_out_kernel, head_num=head_num, d_k=d_k)

    out = pl.pallas_call(
        kernel,
        out_shape=jax.ShapeDtypeStruct((B, S, D), out_dtype),
        grid_spec=pltpu.PrefetchScalarGridSpec(
            num_scalar_prefetch=0,
            grid=(B * nq, nkv),
            in_specs=[q_spec, kv_spec, kv_spec, wo_spec],
            out_specs=out_spec,
            scratch_shapes=[
                pltpu.VMEM((head_num, tq, 1), jnp.float32),   # running max, head-major
                pltpu.VMEM((head_num, tq, 1), jnp.float32),   # running sum, head-major
                pltpu.VMEM((tq, D), jnp.float32),             # output accumulator
            ],
        ),
        compiler_params=pltpu.CompilerParams(
            dimension_semantics=("parallel", "arbitrary"),
            vmem_limit_bytes=vmem_limit),
    )(qp, kp, vp, wo_t)
    return out


# ---------------------------------------------------------------------------
# Pure-JAX reference mirroring the PyTorch forward (eval-mode dropout, mask=None,
# bias=False as in the module).
# ---------------------------------------------------------------------------
def mha_reference(q, k, v, wq, wk, wv, wo, *, head_num):
    B, S, D = q.shape
    d_k = D // head_num
    Q = q @ wq.T
    K = k @ wk.T
    V = v @ wv.T
    Q = Q.reshape(B, S, head_num, d_k).transpose(0, 2, 1, 3)
    K = K.reshape(B, S, head_num, d_k).transpose(0, 2, 1, 3)
    V = V.reshape(B, S, head_num, d_k).transpose(0, 2, 1, 3)
    score = jnp.einsum("bhqd,bhkd->bhqk", Q, K) / math.sqrt(d_k)
    score = jax.nn.softmax(score, axis=-1)
    out = jnp.einsum("bhqk,bhkd->bhqd", score, V)
    out = out.transpose(0, 2, 1, 3).reshape(B, S, D)
    return out @ wo.T


if __name__ == "__main__":
    B, S, D, H = 2, 8, 32, 4

    key = jax.random.PRNGKey(0)
    kq, kk, kv_, kwq, kwk, kwv, kwo = jax.random.split(key, 7)

    q = jax.random.normal(kq, (B, S, D), dtype=jnp.float32)
    k = jax.random.normal(kk, (B, S, D), dtype=jnp.float32)
    v = jax.random.normal(kv_, (B, S, D), dtype=jnp.float32)

    # nn.Linear default init: U(-1/sqrt(in), 1/sqrt(in)), weights stored [out, in].
    bound = 1.0 / math.sqrt(D)
    wq = jax.random.uniform(kwq, (D, D), jnp.float32, -bound, bound)
    wk = jax.random.uniform(kwk, (D, D), jnp.float32, -bound, bound)
    wv = jax.random.uniform(kwv, (D, D), jnp.float32, -bound, bound)
    wo = jax.random.uniform(kwo, (D, D), jnp.float32, -bound, bound)

    # General (cross-attention) path: distinct Q / K / V activations.
    out = mha_pallas(q, k, v, wq, wk, wv, wo, head_num=H)
    out = jax.block_until_ready(out)
    ref = mha_reference(q, k, v, wq, wk, wv, wo, head_num=H)
    assert out.shape == (B, S, D)
    max_err = float(jnp.max(jnp.abs(out - ref)))
    assert jnp.allclose(out, ref, atol=1e-3, rtol=1e-3), \
        f"cross-attn mismatch vs reference (max abs err {max_err})"

    # Self-attention fast path: Q is K is V -> single fused QKV projection.
    out_sa = mha_pallas(q, q, q, wq, wk, wv, wo, head_num=H)
    out_sa = jax.block_until_ready(out_sa)
    ref_sa = mha_reference(q, q, q, wq, wk, wv, wo, head_num=H)
    max_err_sa = float(jnp.max(jnp.abs(out_sa - ref_sa)))
    assert jnp.allclose(out_sa, ref_sa, atol=1e-3, rtol=1e-3), \
        f"self-attn mismatch vs reference (max abs err {max_err_sa})"

    print("KERNEL_OK")
</pallas_src>

<mosaic_0001>
module attributes {stable_mosaic.version = 11 : i64} {
  func.func @_qkv_proj_kernel(%arg0: i32, %arg1: i32, %arg2: memref<16x32xf32, #tpu.memory_space<vmem>>, %arg3: memref<16x32xf32, #tpu.memory_space<vmem>>, %arg4: memref<16x32xf32, #tpu.memory_space<vmem>>, %arg5: memref<32x32xf32, #tpu.memory_space<vmem>>, %arg6: memref<32x32xf32, #tpu.memory_space<vmem>>, %arg7: memref<32x32xf32, #tpu.memory_space<vmem>>, %arg8: memref<16x32xf32, #tpu.memory_space<vmem>>, %arg9: memref<16x32xf32, #tpu.memory_space<vmem>>, %arg10: memref<16x32xf32, #tpu.memory_space<vmem>>) attributes {dimension_semantics = [#tpu.dimension_semantics<parallel>, #tpu.dimension_semantics<parallel>], iteration_bounds = array<i64: 1, 1>, scalar_prefetch = 0 : i64, scratch_operands = 0 : i64, tpu.core_type = #tpu.core_type<tc>, window_params = [{transform_indices = @transform_0, window_bounds = array<i64: 16, 32>}, {transform_indices = @transform_1, window_bounds = array<i64: 16, 32>}, {transform_indices = @transform_2, window_bounds = array<i64: 16, 32>}, {transform_indices = @transform_3, window_bounds = array<i64: 32, 32>}, {transform_indices = @transform_4, window_bounds = array<i64: 32, 32>}, {transform_indices = @transform_5, window_bounds = array<i64: 32, 32>}, {transform_indices = @transform_6, window_bounds = array<i64: 16, 32>}, {transform_indices = @transform_7, window_bounds = array<i64: 16, 32>}, {transform_indices = @transform_8, window_bounds = array<i64: 16, 32>}]} {
    %c0 = arith.constant 0 : index
    %c0_0 = arith.constant 0 : index
    %0 = vector.load %arg2[%c0, %c0_0] : memref<16x32xf32, #tpu.memory_space<vmem>>, vector<16x32xf32>
    %c0_1 = arith.constant 0 : index
    %c0_2 = arith.constant 0 : index
    %1 = vector.load %arg5[%c0_1, %c0_2] : memref<32x32xf32, #tpu.memory_space<vmem>>, vector<32x32xf32>
    %cst = arith.constant dense<0.000000e+00> : vector<16x32xf32>
    %2 = tpu.matmul %0, %1, %cst {dimension_numbers = #tpu.dot_dimension_numbers<[1], [0], [0], [1], [0, 0, 1, 1], [], []>} : vector<16x32xf32>, vector<32x32xf32>, vector<16x32xf32> -> vector<16x32xf32>
    %c0_3 = arith.constant 0 : index
    %c0_4 = arith.constant 0 : index
    %3 = vector.load %arg8[%c0_3, %c0_4] : memref<16x32xf32, #tpu.memory_space<vmem>>, vector<16x32xf32>
    tpu.vector_store %arg8[%c0_3, %c0_4], %2 {strides = array<i32>} : memref<16x32xf32, #tpu.memory_space<vmem>>, vector<16x32xf32>,
    %c0_5 = arith.constant 0 : index
    %c0_6 = arith.constant 0 : index
    %4 = vector.load %arg3[%c0_5, %c0_6] : memref<16x32xf32, #tpu.memory_space<vmem>>, vector<16x32xf32>
    %c0_7 = arith.constant 0 : index
    %c0_8 = arith.constant 0 : index
    %5 = vector.load %arg6[%c0_7, %c0_8] : memref<32x32xf32, #tpu.memory_space<vmem>>, vector<32x32xf32>
    %cst_9 = arith.constant dense<0.000000e+00> : vector<16x32xf32>
    %6 = tpu.matmul %4, %5, %cst_9 {dimension_numbers = #tpu.dot_dimension_numbers<[1], [0], [0], [1], [0, 0, 1, 1], [], []>} : vector<16x32xf32>, vector<32x32xf32>, vector<16x32xf32> -> vector<16x32xf32>
    %c0_10 = arith.constant 0 : index
    %c0_11 = arith.constant 0 : index
    %7 = vector.load %arg9[%c0_10, %c0_11] : memref<16x32xf32, #tpu.memory_space<vmem>>, vector<16x32xf32>
    tpu.vector_store %arg9[%c0_10, %c0_11], %6 {strides = array<i32>} : memref<16x32xf32, #tpu.memory_space<vmem>>, vector<16x32xf32>,
    %c0_12 = arith.constant 0 : index
    %c0_13 = arith.constant 0 : index
    %8 = vector.load %arg4[%c0_12, %c0_13] : memref<16x32xf32, #tpu.memory_space<vmem>>, vector<16x32xf32>
    %c0_14 = arith.constant 0 : index
    %c0_15 = arith.constant 0 : index
    %9 = vector.load %arg7[%c0_14, %c0_15] : memref<32x32xf32, #tpu.memory_space<vmem>>, vector<32x32xf32>
    %cst_16 = arith.constant dense<0.000000e+00> : vector<16x32xf32>
    %10 = tpu.matmul %8, %9, %cst_16 {dimension_numbers = #tpu.dot_dimension_numbers<[1], [0], [0], [1], [0, 0, 1, 1], [], []>} : vector<16x32xf32>, vector<32x32xf32>, vector<16x32xf32> -> vector<16x32xf32>
    %c0_17 = arith.constant 0 : index
    %c0_18 = arith.constant 0 : index
    %11 = vector.load %arg10[%c0_17, %c0_18] : memref<16x32xf32, #tpu.memory_space<vmem>>, vector<16x32xf32>
    tpu.vector_store %arg10[%c0_17, %c0_18], %10 {strides = array<i32>} : memref<16x32xf32, #tpu.memory_space<vmem>>, vector<16x32xf32>,
    return
  }
  func.func @transform_0(%arg0: i32, %arg1: i32) -> (i32, i32) {
    %c0_i32 = arith.constant 0 : i32
    %c0_i32_0 = arith.constant 0 : i32
    return %arg0, %c0_i32 : i32, i32
  }
  func.func @transform_1(%arg0: i32, %arg1: i32) -> (i32, i32) {
    %c0_i32 = arith.constant 0 : i32
    %c0_i32_0 = arith.constant 0 : i32
    return %arg0, %c0_i32 : i32, i32
  }
  func.func @transform_2(%arg0: i32, %arg1: i32) -> (i32, i32) {
    %c0_i32 = arith.constant 0 : i32
    %c0_i32_0 = arith.constant 0 : i32
    return %arg0, %c0_i32 : i32, i32
  }
  func.func @transform_3(%arg0: i32, %arg1: i32) -> (i32, i32) {
    %c0_i32 = arith.constant 0 : i32
    %c0_i32_0 = arith.constant 0 : i32
    return %c0_i32, %arg1 : i32, i32
  }
  func.func @transform_4(%arg0: i32, %arg1: i32) -> (i32, i32) {
    %c0_i32 = arith.constant 0 : i32
    %c0_i32_0 = arith.constant 0 : i32
    return %c0_i32, %arg1 : i32, i32
  }
  func.func @transform_5(%arg0: i32, %arg1: i32) -> (i32, i32) {
    %c0_i32 = arith.constant 0 : i32
    %c0_i32_0 = arith.constant 0 : i32
    return %c0_i32, %arg1 : i32, i32
  }
  func.func @transform_6(%arg0: i32, %arg1: i32) -> (i32, i32) {
    %c0_i32 = arith.constant 0 : i32
    return %arg0, %arg1 : i32, i32
  }
  func.func @transform_7(%arg0: i32, %arg1: i32) -> (i32, i32) {
    %c0_i32 = arith.constant 0 : i32
    return %arg0, %arg1 : i32, i32
  }
  func.func @transform_8(%arg0: i32, %arg1: i32) -> (i32, i32) {
    %c0_i32 = arith.constant 0 : i32
    return %arg0, %arg1 : i32, i32
  }
}

</mosaic_0001>

<bundles_post_ra>
// kernel: tpu_custom_call.1
= control target key start
LH: loop header
LB: loop body
LE: loop exit
PB: predicated region body
PF: predicated region fallthrough
CT: control target
= control target key end

     0   :  { %14 = vsyncpa [#allocation3], 0  ;;  %s811_s0 = inlined_call_operand.hbm [shape: f32[16,32], index: 0, kind: input, shape index: {}]   ;;  %s812_s1 = inlined_call_operand.hbm [shape: f32[16,32], index: 1, kind: input, shape index: {}]   ;;  %s813_s2 = inlined_call_operand.hbm [shape: f32[16,32], index: 2, kind: input, shape index: {}]   ;;  %s814_s3 = inlined_call_operand.hbm [shape: f32[32,32], index: 3, kind: input, shape index: {}]   ;;  %s815_s4 = inlined_call_operand.hbm [shape: f32[32,32], index: 4, kind: input, shape index: {}]   ;;  %s816_s5 = inlined_call_operand.hbm [shape: f32[32,32], index: 5, kind: input, shape index: {}]   ;;  %s817_s6 = inlined_call_operand.hbm [shape: f32[16,32], index: 6, kind: output, shape index: {0}]   ;;  %s818_s7 = inlined_call_operand.hbm [shape: f32[16,32], index: 7, kind: output, shape index: {1}]   ;;  %s819_s8 = inlined_call_operand.hbm [shape: f32[16,32], index: 8, kind: output, shape index: {2}]  }
   0x1   :  { %15 = vsyncpa [#allocation6], 0 }
   0x2   :  { %16 = vsyncpa [#allocation9], 0 }
   0x3   :  { %17 = vsyncpa [#allocation12], 0 }
   0x4   :  { %18 = vsyncpa [#allocation4], 0 }
   0x5   :  { %19 = vsyncpa [#allocation15], 0  ;;  %s689_s27 = smov [#allocation5]   ;;  %s690_s29 = smov [#allocation8]  }
   0x6   :  { %s37_s28 = sshll.u32 %s689_s27, 4  ;;  %s61_s30 = sshll.u32 %s690_s29, 4  ;;  %s38_s28 = int_to_ptr.vmem [resolvable:$true] %s37_s28  ;;  %s62_s30 = int_to_ptr.vmem [resolvable:$true] %s61_s30 }
   0x7   :  { %s505_s9 = scalar_lea.vmem %s38_s28, 256  ;;  %p510_p1 = scmp.lt.s32.totalorder %s38_s28, %s38_s28 }
   0x8   :  { %p506_p0 = scmp.ne.s32.totalorder %s38_s28, %s505_s9  ;;  %p511_p2 = scmp.lt.s32.totalorder %s505_s9, %s505_s9 }
   0xa   :  { %p512_p3 = por %p511_p2, %p510_p1 }
   0xc   :  { %p513_p4 = pnand %p512_p3, %p506_p0 }
   0xe   :  { %516 = shalt.err (!%p513_p4)
}
   0xf   :  { %s691_s10 = smov 128   ;;  %s692_s11 = smov 8  }
  0x10   :  { %43 = dma.hbm_to_vmem [thread:$0]  %s812_s1, 256, %s38_s28, [#allocation6], %s691_s10, %s691_s10, %s692_s11  }
  0x11   :  { %s525_s14 = scalar_lea.vmem %s62_s30, 512  ;;  %p530_p6 = scmp.lt.s32.totalorder %s62_s30, %s62_s30 }
  0x12   :  { %p526_p5 = scmp.ne.s32.totalorder %s62_s30, %s525_s14  ;;  %p531_p7 = scmp.lt.s32.totalorder %s525_s14, %s525_s14 }
  0x14   :  { %p532_p8 = por %p531_p7, %p530_p6 }
  0x16   :  { %p533_p9 = pnand %p532_p8, %p526_p5 }
  0x18   :  { %536 = shalt.err (!%p533_p9)
}
  0x19   :  { %67 = dma.hbm_to_vmem [thread:$0]  %s814_s3, 512, %s62_s30, [#allocation9], %s691_s10, %s691_s10, %s692_s11  }
  0x1a   :  { %s693_s17 = smov [#allocation2]   ;;  %s694_s19 = smov [#allocation7]  }
  0x1b   :  { %s25_s18 = sshll.u32 %s693_s17, 4  ;;  %s49_s20 = sshll.u32 %s694_s19, 4  ;;  %s26_s18 = int_to_ptr.vmem [resolvable:$true] %s25_s18  ;;  %s50_s20 = int_to_ptr.vmem [resolvable:$true] %s49_s20 }
  0x1c   :  { %s545_s1 = scalar_lea.vmem %s26_s18, 256  ;;  %p550_p11 = scmp.lt.s32.totalorder %s26_s18, %s26_s18 }
  0x1d   :  { %p546_p10 = scmp.ne.s32.totalorder %s26_s18, %s545_s1  ;;  %p551_p12 = scmp.lt.s32.totalorder %s545_s1, %s545_s1 }
  0x1f   :  { %p552_p13 = por %p551_p12, %p550_p11 }
  0x21   :  { %p553_p0 = pnand %p552_p13, %p546_p10 }
  0x23   :  { %556 = shalt.err (!%p553_p0)
}
  0x24   :  { %31 = dma.hbm_to_vmem [thread:$0]  %s811_s0, 256, %s26_s18, [#allocation3], %s691_s10, %s691_s10, %s692_s11  }
  0x25   :  { %s565_s3 = scalar_lea.vmem %s50_s20, 256  ;;  %p570_p2 = scmp.lt.s32.totalorder %s50_s20, %s50_s20 }
  0x26   :  { %p566_p1 = scmp.ne.s32.totalorder %s50_s20, %s565_s3  ;;  %p571_p3 = scmp.lt.s32.totalorder %s565_s3, %s565_s3 }
  0x28   :  { %p572_p4 = por %p571_p3, %p570_p2 }
  0x2a   :  { %p573_p5 = pnand %p572_p4, %p566_p1 }
  0x2c   :  { %576 = shalt.err (!%p573_p5)
}
  0x2d   :  { %55 = dma.hbm_to_vmem [thread:$0]  %s813_s2, 256, %s50_s20, [#allocation6], %s691_s10, %s691_s10, %s692_s11  }
  0x2e   :  { %s695_s25 = smov [#allocation10]   ;;  %s696_s27 = smov [#allocation11]  }
  0x2f   :  { %s73_s26 = sshll.u32 %s695_s25, 4  ;;  %s85_s28 = sshll.u32 %s696_s27, 4  ;;  %s74_s26 = int_to_ptr.vmem [resolvable:$true] %s73_s26  ;;  %s86_s28 = int_to_ptr.vmem [resolvable:$true] %s85_s28 }
  0x30   :  { %s585_s0 = scalar_lea.vmem %s74_s26, 512  ;;  %p590_p7 = scmp.lt.s32.totalorder %s74_s26, %s74_s26 }
  0x31   :  { %p586_p6 = scmp.ne.s32.totalorder %s74_s26, %s585_s0  ;;  %p591_p8 = scmp.lt.s32.totalorder %s585_s0, %s585_s0 }
  0x33   :  { %p592_p9 = por %p591_p8, %p590_p7 }
  0x35   :  { %p593_p10 = pnand %p592_p9, %p586_p6 }
  0x37   :  { %596 = shalt.err (!%p593_p10)
}
  0x38   :  { %79 = dma.hbm_to_vmem [thread:$0]  %s815_s4, 512, %s74_s26, [#allocation9], %s691_s10, %s691_s10, %s692_s11  }
  0x39   :  { %s605_s2 = scalar_lea.vmem %s86_s28, 512  ;;  %p610_p12 = scmp.lt.s32.totalorder %s86_s28, %s86_s28 }
  0x3a   :  { %p606_p11 = scmp.ne.s32.totalorder %s86_s28, %s605_s2  ;;  %p611_p13 = scmp.lt.s32.totalorder %s605_s2, %s605_s2 }
  0x3c   :  { %p612_p0 = por %p611_p13, %p610_p12 }
  0x3e   :  { %p613_p1 = pnand %p612_p0, %p606_p11 }
  0x40   :  { %616 = shalt.err (!%p613_p1)
}
  0x41   :  { %91 = dma.hbm_to_vmem [thread:$0]  %s816_s5, 512, %s86_s28, [#allocation12], %s691_s10, %s691_s10, %s692_s11  }
  0x42   :  { %677 = dma.done.wait [#allocation3], 256  }
  0x43   :  { %678 = vsyncadd [#allocation3], 4294967040 }
  0x44   :  { %679 = dma.done.wait [#allocation6], 512  }
  0x45   :  { %680 = vsyncadd [#allocation6], 4294966784 }
  0x46   :  { %681 = dma.done.wait [#allocation9], 1024  }
  0x47   :  { %682 = vsyncadd [#allocation9], 4294966272 }
  0x48   :  { %683 = dma.done.wait [#allocation12], 512  }
  0x49   :  { %684 = vsyncadd [#allocation12], 4294966784  ;;  %v115_v0 = vld [vmem:[#allocation8 + $0x18] sm:$0xff]  ;;  %v114_v1 = vld [vmem:[#allocation8 + $0x10] sm:$0xff]  ;;  %vm116_vm0 = vcmask 261120   ;;  %s697_s4 = smov [#allocation13]  }
  0x4a   :  { %453 = vmatprep.subr.mxu0 %v115_v0  ;;  %v205_v2 = vld [vmem:[#allocation10 + $0x18] sm:$0xff]  ;;  %v110_v3 = vld [vmem:[#allocation2] sm:$0xff]  ;;  %v113_v4 = vld [vmem:[#allocation8 + $0x8] sm:$0xff]  ;;  %s383_s5 = sshll.u32 %s697_s4, 4  ;;  %s698_s13 = smov [#allocation14]   ;;  %s384_s5 = int_to_ptr.vmem [resolvable:$true] %s383_s5 }
  0x4b   :  { %454 = vmatpush3.msra.mxu0 %v115_v0  ;;  %464 = vmatprep.subr.mxu1 %v205_v2  ;;  %v204_v5 = vld [vmem:[#allocation10 + $0x10] sm:$0xff]  ;;  %v112_v6 = vld [vmem:[#allocation8] sm:$0xff]  ;;  %v203_v7 = vld [vmem:[#allocation10 + $0x8] sm:$0xff]  ;;  %s395_s14 = sshll.u32 %s698_s13, 4  ;;  %s617_s15 = scalar_lea.vmem %s384_s5, 256  ;;  %s396_s14 = int_to_ptr.vmem [resolvable:$true] %s395_s14 }
  0x4c   :  { %455 = vmatprep.subr.mxu0 %v114_v1  ;;  %465 = vmatpush3.msra.mxu1 %v205_v2  ;;  %v111_v8 = vld [vmem:[#allocation2 + $0x8] sm:$0xff]  ;;  %v202_v10 = vld [vmem:[#allocation10] sm:$0xff]  ;;  %v293_v11 = vld [vmem:[#allocation11 + $0x10] sm:$0xff]  ;;  %p618_p2 = scmp.ne.s32.totalorder %s384_s5, %s617_s15  ;;  %p622_p3 = scmp.lt.s32.totalorder %s384_s5, %s384_s5 }
  0x4d   :  { %456 = vmatpush3.msra.mxu0 %v114_v1  ;;  %461 = vmatprep.mubr.msk.f32.mxu0 %vm116_vm0, %v110_v3  ;;  %v294_v9 = vld [vmem:[#allocation11 + $0x18] sm:$0xff]  ;;  %v200_v12 = vld [vmem:[#allocation5] sm:$0xff]  ;;  %v292_v13 = vld [vmem:[#allocation11 + $0x8] sm:$0xff]  ;;  %p623_p4 = scmp.lt.s32.totalorder %s617_s15, %s617_s15 }
  0x4e   :  { %457 = vmatprep.subr.mxu0 %v113_v4  ;;  %466 = vmatprep.subr.mxu1 %v204_v5  ;;  %v201_v14 = vld [vmem:[#allocation5 + $0x8] sm:$0xff]  ;;  %v289_v15 = vld [vmem:[#allocation7] sm:$0xff]  ;;  %v291_v16 = vld [vmem:[#allocation11] sm:$0xff] }
  0x4f   :  { %458 = vmatpush3.msra.mxu0 %v113_v4  ;;  %467 = vmatpush3.msra.mxu1 %v204_v5  ;;  %v290_v17 = vld [vmem:[#allocation7 + $0x8] sm:$0xff]  ;;  %p624_p5 = por %p623_p4, %p622_p3 }
  0x50   :  { %459 = vmatprep.subr.mxu0 %v112_v6  ;;  %468 = vmatprep.subr.mxu1 %v203_v7 }
  0x51   :  { %460 = vmatpush3.msra.mxu0 %v112_v6  ;;  %469 = vmatpush3.msra.mxu1 %v203_v7  ;;  %p625_p6 = pnand %p624_p5, %p618_p2 }
  0x52   :  { %462 = vmatmul.mubr.msk.f32.vlgmr.msra.gmra.mxu0 %vm116_vm0, %v111_v8  ;;  %475 = vmatprep.subr.mxu0 %v294_v9 }
  0x53   :  { %476 = vmatpush3.msra.mxu0 %v294_v9  ;;  %470 = vmatprep.subr.mxu1 %v202_v10 }
  0x54   :  { %477 = vmatprep.subr.mxu0 %v293_v11  ;;  %471 = vmatpush3.msra.mxu1 %v202_v10 }
  0x55   :  { %478 = vmatpush3.msra.mxu0 %v293_v11  ;;  %472 = vmatprep.mubr.msk.f32.mxu1 %vm116_vm0, %v200_v12 }
  0x56   :  { %479 = vmatprep.subr.mxu0 %v292_v13  ;;  %473 = vmatmul.mubr.msk.f32.vlgmr.msra.gmra.mxu1 %vm116_vm0, %v201_v14 }
  0x57   :  { %480 = vmatpush3.msra.mxu0 %v292_v13  ;;  %483 = vmatprep.mubr.msk.f32.mxu0 %vm116_vm0, %v289_v15 }
  0x58   :  { %481 = vmatprep.subr.mxu0 %v291_v16 }
  0x59   :  { %482 = vmatpush3.msra.mxu0 %v291_v16 }
  0x5a   :  { %484 = vmatmul.mubr.msk.f32.vlgmr.msra.gmra.mxu0 %vm116_vm0, %v290_v17 }
 0x112   :  { %v463_v18 = vpop.f32.mrf.mxu0 }
 0x113   :  { %199 = vst.msk [vmem:[#allocation13 + $0x8] sm:$0xff] %vm116_vm0, %v463_v18 }
 0x114   :  { %v189_v19 = vpop.f32.mrf.mxu0 }
 0x115   :  { %198 = vst.msk [vmem:[#allocation13] sm:$0xff] %vm116_vm0, %v189_v19 }
 0x116   :  { %v474_v20 = vpop.f32.mrf.mxu1 }
 0x117   :  { %628 = shalt.err (!%p625_p6)
}
 0x118   :  { %389 = dma.vmem_to_hbm [thread:$0]  %s384_s5, 256, %s817_s6, [#allocation4], %s691_s10, %s691_s10, %s692_s11   ;;  %288 = vst.msk [vmem:[#allocation14 + $0x8] sm:$0xff] %vm116_vm0, %v474_v20  ;;  %v278_v21 = vpop.f32.mrf.mxu1 }
 0x119   :  { %s699_s18 = smov [#allocation16]   ;;  %287 = vst.msk [vmem:[#allocation14] sm:$0xff] %vm116_vm0, %v278_v21  ;;  %s637_s20 = scalar_lea.vmem %s396_s14, 256 }
 0x11a   :  { %s407_s19 = sshll.u32 %s699_s18, 4  ;;  %v485_v22 = vpop.f32.mrf.mxu0  ;;  %p638_p7 = scmp.ne.s32.totalorder %s396_s14, %s637_s20  ;;  %s408_s19 = int_to_ptr.vmem [resolvable:$true] %s407_s19 }
 0x11b   :  { %p642_p8 = scmp.lt.s32.totalorder %s396_s14, %s396_s14  ;;  %p643_p9 = scmp.lt.s32.totalorder %s637_s20, %s637_s20 }
 0x11d   :  { %p644_p10 = por %p643_p9, %p642_p8 }
 0x11f   :  { %p645_p11 = pnand %p644_p10, %p638_p7 }
 0x121   :  { %648 = shalt.err (!%p645_p11)
}
 0x122   :  { %401 = dma.vmem_to_hbm [thread:$0]  %s396_s14, 256, %s818_s7, [#allocation15], %s691_s10, %s691_s10, %s692_s11   ;;  %377 = vst.msk [vmem:[#allocation16 + $0x8] sm:$0xff] %vm116_vm0, %v485_v22  ;;  %v367_v23 = vpop.f32.mrf.mxu0 }
 0x123   :  { %376 = vst.msk [vmem:[#allocation16] sm:$0xff] %vm116_vm0, %v367_v23  ;;  %s657_s21 = scalar_lea.vmem %s408_s19, 256  ;;  %p662_p13 = scmp.lt.s32.totalorder %s408_s19, %s408_s19 }
 0x124   :  { %p658_p12 = scmp.ne.s32.totalorder %s408_s19, %s657_s21  ;;  %p663_p0 = scmp.lt.s32.totalorder %s657_s21, %s657_s21 }
 0x126   :  { %p664_p1 = por %p663_p0, %p662_p13 }
 0x128   :  { %p665_p2 = pnand %p664_p1, %p658_p12 }
 0x12a   :  { %668 = shalt.err (!%p665_p2)
}
 0x12b   :  { %413 = dma.vmem_to_hbm [thread:$0]  %s408_s19, 256, %s819_s8, [#allocation15], %s691_s10, %s691_s10, %s692_s11  }
 0x12c   :  { %685 = dma.done.wait [#allocation4], 256  }
 0x12d   :  { %686 = vsyncadd [#allocation4], 4294967040 }
 0x12e   :  { %687 = dma.done.wait [#allocation15], 512  }
 0x12f   :  { %688 = vsyncadd [#allocation15], 4294966784 }
 0x130   :  { %423 = vsyncpa [#allocation3], 1 }
 0x131   :  { %424 = vsyncpa [#allocation6], 1 }
 0x132   :  { %425 = vsyncpa [#allocation9], 1 }
 0x133   :  { %426 = vsyncpa [#allocation12], 1 }
 0x134   :  { %427 = vsyncpa [#allocation4], 1 }
 0x135   :  { %428 = vsyncpa [#allocation15], 1 }

</bundles_post_ra>
